<compile_context>
chip_gen: v5e
topology: v5e:2x2
jax: 0.10.0
libtpu: 0.0.40
codegen_flags: <defaults>
</compile_context>

<pallas_src>
import jax
import jax.numpy as jnp
from jax.experimental import pallas as pl
from jax.experimental.pallas import tpu as pltpu


def _lgm_kernel(x_ref, wq_ref, wl_ref, bias_ref, out_ref):
    # x_ref:    (TB, D)  raw (pre-BN) flattened activations, f32 or bf16
    # wq_ref:   (D, K)   folded quadratic weights, bf16
    # wl_ref:   (D, K)   folded linear weights, bf16
    # bias_ref: (1, K)   per-class constant, f32
    # out_ref:  (TB, K)  logits, f32
    x = x_ref[...]
    xf = x.astype(jnp.float32)                    # square in f32 on the VPU
    xsq_bf = (xf * xf).astype(jnp.bfloat16)       # MXU operand only is bf16
    x_bf = x.astype(jnp.bfloat16)                 # no-op if x already bf16
    out_ref[...] = (
        jnp.dot(xsq_bf, wq_ref[...], preferred_element_type=jnp.float32)
        + jnp.dot(x_bf, wl_ref[...], preferred_element_type=jnp.float32)
        + bias_ref[...]
    )


def _round_up(n, m):
    return ((n + m - 1) // m) * m


def lgm_logits(x_nchw, gamma, beta, running_mean, running_var,
               centroids, inv_std, eps=1e-5, block_b=512,
               core_parallel=False):
    """Pallas implementation of LGM_logits.forward (target=None,
    default flags: no avgpool, avg_ker_size=1, no bottleneck).

    `core_parallel=True` is intended for v7x (2 TensorCores per chip)."""
    B, C, H, W = x_nchw.shape
    D = C * H * W
    K = centroids.shape[1]
    f32 = jnp.float32

    centroids = centroids.astype(f32)
    inv_std = inv_std.astype(f32)

    # ---------- x-independent math (runs once, outside the kernel) ----------
    # Eval-mode BatchNorm2d fold: x_bn = s * x + t per flattened feature.
    s_c = gamma.astype(f32) / jnp.sqrt(running_var.astype(f32) + eps)   # (C,)
    t_c = beta.astype(f32) - running_mean.astype(f32) * s_c             # (C,)
    s = jnp.repeat(s_c, H * W)                                          # (D,)
    t = jnp.repeat(t_c, H * W)                                          # (D,)

    inv_var = inv_std * inv_std                                         # (D,K)
    w = centroids * inv_var                                             # (D,K)

    # logits = x^2 @ Wq + x @ Wl + bias    (BN and the -0.5 factor folded in)
    w_quad = ((-0.5) * (s * s)[:, None] * inv_var).astype(jnp.bfloat16)  # (D,K)
    w_lin = (s[:, None] * (w - t[:, None] * inv_var)).astype(jnp.bfloat16)
    bias = (
        jnp.sum(jnp.log(inv_std), axis=0, keepdims=True)                # log det
        - 0.5 * jnp.sum(centroids * centroids * inv_var, axis=0, keepdims=True)
        - 0.5 * jnp.sum((t * t)[:, None] * inv_var, axis=0, keepdims=True)
        + jnp.sum(t[:, None] * w, axis=0, keepdims=True)
    ).astype(f32)                                                       # (1,K)

    # ---------- batch tiling (no wrapper-side pad pass over x) ----------
    tb = max(8, min(_round_up(block_b, 8), _round_up(B, 8)))
    grid = (pl.cdiv(B, tb),)   # ragged last tile handled by masked stores

    x_flat = x_nchw.reshape(B, D)   # no dtype cast: accept bf16 x directly

    dim_sem = ((pltpu.CORE_PARALLEL,) if core_parallel else ("parallel",))

    x_bytes = tb * D * jnp.dtype(x_flat.dtype).itemsize
    out_bytes = tb * K * 4
    w_bytes = 2 * D * K * 2 + K * 4        # wq + wl (bf16) + bias (f32)

    def _call(single_buffer_weights):
        resident = (dict(pipeline_mode=pl.Buffered(1))
                    if single_buffer_weights else {})
        n_wbuf = 1 if single_buffer_weights else 2
        est = 2 * x_bytes + 2 * out_bytes + n_wbuf * w_bytes
        vmem_limit = int(min(max(2 * est + (4 << 20), 32 << 20), 96 << 20))
        return pl.pallas_call(
            _lgm_kernel,
            out_shape=jax.ShapeDtypeStruct((B, K), f32),
            grid=grid,
            in_specs=[
                pl.BlockSpec((tb, D), lambda i: (i, 0)),
                pl.BlockSpec((D, K), lambda i: (0, 0), **resident),
                pl.BlockSpec((D, K), lambda i: (0, 0), **resident),
                pl.BlockSpec((1, K), lambda i: (0, 0), **resident),
            ],
            out_specs=pl.BlockSpec((tb, K), lambda i: (i, 0)),
            compiler_params=pltpu.CompilerParams(
                dimension_semantics=dim_sem,
                vmem_limit_bytes=vmem_limit),
        )(x_flat, w_quad, w_lin, bias)

    try:
        return _call(True)
    except Exception:
        # Fallback for JAX versions that reject single-buffered operands.
        return _call(False)


def lgm_logits_ref(x_nchw, gamma, beta, running_mean, running_var,
                   centroids, inv_std, eps=1e-5):
    """Pure-JAX f32 reference (matches the PyTorch forward, target=None)."""
    B, C, H, W = x_nchw.shape
    xn = (x_nchw.astype(jnp.float32) - running_mean[None, :, None, None]) / jnp.sqrt(
        running_var[None, :, None, None] + eps)
    xn = xn * gamma[None, :, None, None] + beta[None, :, None, None]
    x = xn.reshape(B, -1)
    inv_var = inv_std ** 2
    t1 = x ** 2 @ inv_var
    t2 = x @ (centroids * inv_var)
    mu_term = jnp.sum(centroids ** 2 * inv_var, axis=0, keepdims=True)
    neg_sqr_dist = -0.5 * (t1 - 2.0 * t2 + mu_term)
    # sum-of-logs == log(prod) of inv_std, but numerically stable for large D
    log_det = jnp.sum(jnp.log(inv_std), axis=0, keepdims=True)
    return neg_sqr_dist + log_det


if __name__ == "__main__":
    # Small shapes consistent with the module:
    #   n_space=8, nb_channels_in=4 -> rep_size = 4*8*8 = 256, nb_classes=128
    B, C, H, W = 32, 4, 8, 8
    D = C * H * W
    K = 128

    key = jax.random.PRNGKey(0)
    kx, kc, ks, kg, kb, km, kv = jax.random.split(key, 7)

    x = jax.random.normal(kx, (B, C, H, W), dtype=jnp.float32)

    # centroids: xavier_uniform((rep_size, nb_classes)); inv_std: a positive
    # parameter (init'd to ones in the module; randomized here to exercise
    # the log-det / mu-term math).
    bound = float(jnp.sqrt(6.0 / (D + K)))
    centroids = jax.random.uniform(kc, (D, K), jnp.float32, -bound, bound)
    inv_std = jax.random.uniform(ks, (D, K), jnp.float32, 0.5, 1.5)

    # Non-trivial eval-mode BatchNorm parameters / running stats.
    gamma = 1.0 + 0.1 * jax.random.normal(kg, (C,), jnp.float32)
    beta = 0.1 * jax.random.normal(kb, (C,), jnp.float32)
    running_mean = 0.1 * jax.random.normal(km, (C,), jnp.float32)
    running_var = jax.random.uniform(kv, (C,), jnp.float32, 0.5, 1.5)

    ref = lgm_logits_ref(x, gamma, beta, running_mean, running_var,
                         centroids, inv_std)

    # Default (large) batch tile: tb clamps to round_up(B,8)=32 -> 1 grid step.
    out_big = lgm_logits(x, gamma, beta, running_mean, running_var,
                         centroids, inv_std)
    out_big = jax.block_until_ready(out_big)

    # Small tile to exercise the multi-step pipeline (4 grid steps).
    out_small = lgm_logits(x, gamma, beta, running_mean, running_var,
                           centroids, inv_std, block_b=8)
    out_small = jax.block_until_ready(out_small)

    for out in (out_big, out_small):
        assert out.shape == (B, K)
        # bf16 MXU operands (f32 accumulate) -> loosened tolerance vs f32 ref.
        max_err = float(jnp.max(jnp.abs(out - ref)))
        assert jnp.allclose(out, ref, rtol=2e-2, atol=5e-1), max_err

    print("KERNEL_OK")
</pallas_src>

<mosaic_0001>
module attributes {stable_mosaic.version = 11 : i64} {
  func.func @_lgm_kernel(%arg0: i32, %arg1: memref<32x256xf32, #tpu.memory_space<vmem>>, %arg2: memref<256x128xbf16, #tpu.memory_space<vmem>>, %arg3: memref<256x128xbf16, #tpu.memory_space<vmem>>, %arg4: memref<1x128xf32, #tpu.memory_space<vmem>>, %arg5: memref<32x128xf32, #tpu.memory_space<vmem>>) attributes {dimension_semantics = [#tpu.dimension_semantics<parallel>], iteration_bounds = array<i64: 1>, scalar_prefetch = 0 : i64, scratch_operands = 0 : i64, tpu.core_type = #tpu.core_type<tc>, window_params = [{transform_indices = @transform_0, window_bounds = array<i64: 32, 256>}, {pipeline_mode = #tpu.pipeline_mode<synchronous>, transform_indices = @transform_1, window_bounds = array<i64: 256, 128>}, {pipeline_mode = #tpu.pipeline_mode<synchronous>, transform_indices = @transform_2, window_bounds = array<i64: 256, 128>}, {pipeline_mode = #tpu.pipeline_mode<synchronous>, transform_indices = @transform_3, window_bounds = array<i64: 1, 128>}, {transform_indices = @transform_4, window_bounds = array<i64: 32, 128>}]} {
    %c0 = arith.constant 0 : index
    %c0_0 = arith.constant 0 : index
    %0 = vector.load %arg1[%c0, %c0_0] : memref<32x256xf32, #tpu.memory_space<vmem>>, vector<32x256xf32>
    %1 = arith.mulf %0, %0 : vector<32x256xf32>
    %2 = arith.truncf %1 : vector<32x256xf32> to vector<32x256xbf16>
    %3 = arith.truncf %0 : vector<32x256xf32> to vector<32x256xbf16>
    %c0_1 = arith.constant 0 : index
    %c0_2 = arith.constant 0 : index
    %4 = vector.load %arg2[%c0_1, %c0_2] : memref<256x128xbf16, #tpu.memory_space<vmem>>, vector<256x128xbf16>
    %cst = arith.constant dense<0.000000e+00> : vector<32x128xf32>
    %5 = tpu.matmul %2, %4, %cst {dimension_numbers = #tpu.dot_dimension_numbers<[1], [0], [0], [1], [0, 0, 1, 1], [], []>} : vector<32x256xbf16>, vector<256x128xbf16>, vector<32x128xf32> -> vector<32x128xf32>
    %c0_3 = arith.constant 0 : index
    %c0_4 = arith.constant 0 : index
    %6 = vector.load %arg3[%c0_3, %c0_4] : memref<256x128xbf16, #tpu.memory_space<vmem>>, vector<256x128xbf16>
    %cst_5 = arith.constant dense<0.000000e+00> : vector<32x128xf32>
    %7 = tpu.matmul %3, %6, %cst_5 {dimension_numbers = #tpu.dot_dimension_numbers<[1], [0], [0], [1], [0, 0, 1, 1], [], []>} : vector<32x256xbf16>, vector<256x128xbf16>, vector<32x128xf32> -> vector<32x128xf32>
    %8 = arith.addf %5, %7 : vector<32x128xf32>
    %c0_6 = arith.constant 0 : index
    %c0_7 = arith.constant 0 : index
    %9 = vector.load %arg4[%c0_6, %c0_7] : memref<1x128xf32, #tpu.memory_space<vmem>>, vector<1x128xf32>
    %10 = vector.broadcast %9 : vector<1x128xf32> to vector<32x128xf32>
    %11 = arith.addf %8, %10 : vector<32x128xf32>
    %c0_8 = arith.constant 0 : index
    %c0_9 = arith.constant 0 : index
    %12 = vector.load %arg5[%c0_8, %c0_9] : memref<32x128xf32, #tpu.memory_space<vmem>>, vector<32x128xf32>
    tpu.vector_store %arg5[%c0_8, %c0_9], %11 {strides = array<i32>} : memref<32x128xf32, #tpu.memory_space<vmem>>, vector<32x128xf32>,
    return
  }
  func.func @transform_0(%arg0: i32) -> (i32, i32) {
    %c0_i32 = arith.constant 0 : i32
    %c0_i32_0 = arith.constant 0 : i32
    return %arg0, %c0_i32 : i32, i32
  }
  func.func @transform_1(%arg0: i32) -> (i32, i32) {
    %c0_i32 = arith.constant 0 : i32
    %c0_i32_0 = arith.constant 0 : i32
    %c0_i32_1 = arith.constant 0 : i32
    return %c0_i32, %c0_i32_0 : i32, i32
  }
  func.func @transform_2(%arg0: i32) -> (i32, i32) {
    %c0_i32 = arith.constant 0 : i32
    %c0_i32_0 = arith.constant 0 : i32
    %c0_i32_1 = arith.constant 0 : i32
    return %c0_i32, %c0_i32_0 : i32, i32
  }
  func.func @transform_3(%arg0: i32) -> (i32, i32) {
    %c0_i32 = arith.constant 0 : i32
    %c0_i32_0 = arith.constant 0 : i32
    %c0_i32_1 = arith.constant 0 : i32
    return %c0_i32, %c0_i32_0 : i32, i32
  }
  func.func @transform_4(%arg0: i32) -> (i32, i32) {
    %c0_i32 = arith.constant 0 : i32
    %c0_i32_0 = arith.constant 0 : i32
    return %arg0, %c0_i32 : i32, i32
  }
}

module attributes {stable_mosaic.version = 11 : i64} {
  func.func @_lgm_kernel(%arg0: i32, %arg1: memref<32x256xf32, #tpu.memory_space<vmem>>, %arg2: memref<256x128xbf16, #tpu.memory_space<vmem>>, %arg3: memref<256x128xbf16, #tpu.memory_space<vmem>>, %arg4: memref<1x128xf32, #tpu.memory_space<vmem>>, %arg5: memref<32x128xf32, #tpu.memory_space<vmem>>) attributes {dimension_semantics = [#tpu.dimension_semantics<parallel>], iteration_bounds = array<i64: 1>, scalar_prefetch = 0 : i64, scratch_operands = 0 : i64, tpu.core_type = #tpu.core_type<tc>, window_params = [{transform_indices = @transform_0, window_bounds = array<i64: 32, 256>}, {pipeline_mode = #tpu.pipeline_mode<synchronous>, transform_indices = @transform_1, window_bounds = array<i64: 256, 128>}, {pipeline_mode = #tpu.pipeline_mode<synchronous>, transform_indices = @transform_2, window_bounds = array<i64: 256, 128>}, {pipeline_mode = #tpu.pipeline_mode<synchronous>, transform_indices = @transform_3, window_bounds = array<i64: 1, 128>}, {transform_indices = @transform_4, window_bounds = array<i64: 32, 128>}]} {
    %c0 = arith.constant 0 : index
    %c0_0 = arith.constant 0 : index
    %0 = vector.load %arg1[%c0, %c0_0] : memref<32x256xf32, #tpu.memory_space<vmem>>, vector<32x256xf32>
    %1 = arith.mulf %0, %0 : vector<32x256xf32>
    %2 = arith.truncf %1 : vector<32x256xf32> to vector<32x256xbf16>
    %3 = arith.truncf %0 : vector<32x256xf32> to vector<32x256xbf16>
    %c0_1 = arith.constant 0 : index
    %c0_2 = arith.constant 0 : index
    %4 = vector.load %arg2[%c0_1, %c0_2] : memref<256x128xbf16, #tpu.memory_space<vmem>>, vector<256x128xbf16>
    %cst = arith.constant dense<0.000000e+00> : vector<32x128xf32>
    %5 = tpu.matmul %2, %4, %cst {dimension_numbers = #tpu.dot_dimension_numbers<[1], [0], [0], [1], [0, 0, 1, 1], [], []>} : vector<32x256xbf16>, vector<256x128xbf16>, vector<32x128xf32> -> vector<32x128xf32>
    %c0_3 = arith.constant 0 : index
    %c0_4 = arith.constant 0 : index
    %6 = vector.load %arg3[%c0_3, %c0_4] : memref<256x128xbf16, #tpu.memory_space<vmem>>, vector<256x128xbf16>
    %cst_5 = arith.constant dense<0.000000e+00> : vector<32x128xf32>
    %7 = tpu.matmul %3, %6, %cst_5 {dimension_numbers = #tpu.dot_dimension_numbers<[1], [0], [0], [1], [0, 0, 1, 1], [], []>} : vector<32x256xbf16>, vector<256x128xbf16>, vector<32x128xf32> -> vector<32x128xf32>
    %8 = arith.addf %5, %7 : vector<32x128xf32>
    %c0_6 = arith.constant 0 : index
    %c0_7 = arith.constant 0 : index
    %9 = vector.load %arg4[%c0_6, %c0_7] : memref<1x128xf32, #tpu.memory_space<vmem>>, vector<1x128xf32>
    %10 = vector.broadcast %9 : vector<1x128xf32> to vector<32x128xf32>
    %11 = arith.addf %8, %10 : vector<32x128xf32>
    %c0_8 = arith.constant 0 : index
    %c0_9 = arith.constant 0 : index
    %12 = vector.load %arg5[%c0_8, %c0_9] : memref<32x128xf32, #tpu.memory_space<vmem>>, vector<32x128xf32>
    tpu.vector_store %arg5[%c0_8, %c0_9], %11 {strides = array<i32>} : memref<32x128xf32, #tpu.memory_space<vmem>>, vector<32x128xf32>,
    return
  }
  func.func @transform_0(%arg0: i32) -> (i32, i32) {
    %c0_i32 = arith.constant 0 : i32
    %c0_i32_0 = arith.constant 0 : i32
    return %arg0, %c0_i32 : i32, i32
  }
  func.func @transform_1(%arg0: i32) -> (i32, i32) {
    %c0_i32 = arith.constant 0 : i32
    %c0_i32_0 = arith.constant 0 : i32
    %c0_i32_1 = arith.constant 0 : i32
    return %c0_i32, %c0_i32_0 : i32, i32
  }
  func.func @transform_2(%arg0: i32) -> (i32, i32) {
    %c0_i32 = arith.constant 0 : i32
    %c0_i32_0 = arith.constant 0 : i32
    %c0_i32_1 = arith.constant 0 : i32
    return %c0_i32, %c0_i32_0 : i32, i32
  }
  func.func @transform_3(%arg0: i32) -> (i32, i32) {
    %c0_i32 = arith.constant 0 : i32
    %c0_i32_0 = arith.constant 0 : i32
    %c0_i32_1 = arith.constant 0 : i32
    return %c0_i32, %c0_i32_0 : i32, i32
  }
  func.func @transform_4(%arg0: i32) -> (i32, i32) {
    %c0_i32 = arith.constant 0 : i32
    %c0_i32_0 = arith.constant 0 : i32
    return %arg0, %c0_i32 : i32, i32
  }
}

</mosaic_0001>

<bundles_post_ra>
// kernel: tpu_custom_call.1
= control target key start
LH: loop header
LB: loop body
LE: loop exit
PB: predicated region body
PF: predicated region fallthrough
CT: control target
= control target key end

     0   :  { %9 = vsyncpa [#allocation3], 0  ;;  %s776_s0 = inlined_call_operand.hbm [shape: f32[32,256], index: 0, kind: input, shape index: {}]   ;;  %s777_s1 = inlined_call_operand.hbm [shape: bf16[256,128], index: 1, kind: input, shape index: {}]   ;;  %s778_s2 = inlined_call_operand.hbm [shape: bf16[256,128], index: 2, kind: input, shape index: {}]   ;;  %s779_s3 = inlined_call_operand.vmem [shape: f32[1,128], index: 3, kind: input, shape index: {}]   ;;  %s780_s4 = inlined_call_operand.hbm [shape: f32[32,128], index: 4, kind: output, shape index: {}]  }
   0x1   :  { %10 = vsyncpa [#allocation6], 0  ;;  %s29_s17 = sshll.u32 %s777_s1, 4  ;;  %s30_s17 = int_to_ptr.hbm [resolvable:$true] %s29_s17 }
   0x2   :  { %11 = vsyncpa [#allocation4], 0  ;;  %s726_s18 = smov [#allocation5]   ;;  %s16_s22 = sshll.u32 %s776_s0, 4  ;;  %s17_s22 = int_to_ptr.hbm [resolvable:$true] %s16_s22 }
   0x3   :  { %s31_s19 = sshll.u32 %s726_s18, 4  ;;  %s727_s23 = smov 64   ;;  %s32_s19 = int_to_ptr.vmem [resolvable:$true] %s31_s19 }
   0x4   :  { %s728_s24 = smov 4   ;;  %s729_s25 = smov [#allocation2]  }
   0x5   :  { %37 = dma.hbm_to_vmem [thread:$0]  %s30_s17, 2048, %s32_s19, [#allocation6], %s727_s23, %s727_s23, %s728_s24  }
   0x6   :  { %s18_s26 = sshll.u32 %s729_s25, 4  ;;  %s730_s27 = smov 256   ;;  %s19_s26 = int_to_ptr.vmem [resolvable:$true] %s18_s26 }
   0x7   :  { %s731_s28 = smov 16   ;;  %s42_s30 = sshll.u32 %s778_s2, 4  ;;  %s43_s30 = int_to_ptr.hbm [resolvable:$true] %s42_s30 }
   0x8   :  { %24 = dma.hbm_to_vmem [thread:$0]  %s17_s22, 1024, %s19_s26, [#allocation3], %s730_s27, %s730_s27, %s731_s28  }
   0x9   :  { %s732_s5 = smov [#allocation7]  }
   0xa   :  { %s44_s6 = sshll.u32 %s732_s5, 4  ;;  %s45_s6 = int_to_ptr.vmem [resolvable:$true] %s44_s6 }
   0xb   :  { %50 = dma.hbm_to_vmem [thread:$0]  %s43_s30, 2048, %s45_s6, [#allocation6], %s727_s23, %s727_s23, %s728_s24  }
   0xc   :  { %720 = dma.done.wait [#allocation3], 1024  }
   0xd   :  { %721 = vsyncadd [#allocation3], 4294966272 }
   0xe   :  { %722 = dma.done.wait [#allocation6], 4096  }
   0xf   :  { %723 = vsyncadd [#allocation6], 4294963200  ;;  %v604_v0 = vld [vmem:[#allocation7 + $0x38] sm:$0xff]  ;;  %v603_v4 = vld [vmem:[#allocation7 + $0x30] sm:$0xff]  ;;  %s439_s10 = sshll.u32 %s780_s4, 4  ;;  %s734_s11 = smov 128   ;;  %s440_s10 = int_to_ptr.hbm [resolvable:$true] %s439_s10 }
  0x10   :  { %v612_v1 = vld [vmem:[#allocation7 + $0x78] sm:$0xff]  ;;  %249 = vmatpush.bf16.msra.mxu0 %v604_v0  ;;  %v611_v5 = vld [vmem:[#allocation7 + $0x70] sm:$0xff]  ;;  %v602_v8 = vld [vmem:[#allocation7 + $0x28] sm:$0xff]  ;;  %s735_s12 = smov 8  }
  0x11   :  { %v588_v2 = vld [vmem:[#allocation5 + $0x38] sm:$0xff]  ;;  %268 = vmatpush.bf16.msra.mxu1 %v612_v1  ;;  %v587_v6 = vld [vmem:[#allocation5 + $0x30] sm:$0xff]  ;;  %v610_v9 = vld [vmem:[#allocation7 + $0x68] sm:$0xff] }
  0x12   :  { %v596_v3 = vld [vmem:[#allocation5 + $0x78] sm:$0xff]  ;;  %383 = vmatpush.bf16.msra.mxu2 %v588_v2  ;;  %v595_v7 = vld [vmem:[#allocation5 + $0x70] sm:$0xff]  ;;  %v586_v10 = vld [vmem:[#allocation5 + $0x28] sm:$0xff] }
  0x13   :  { %402 = vmatpush.bf16.msra.mxu3 %v596_v3  ;;  %v594_v11 = vld [vmem:[#allocation5 + $0x68] sm:$0xff]  ;;  %v601_v12 = vld [vmem:[#allocation7 + $0x20] sm:$0xff]  ;;  %v600_v16 = vld [vmem:[#allocation7 + $0x18] sm:$0xff] }
  0x14   :  { %250 = vmatpush.bf16.msra.mxu0 %v603_v4  ;;  %v609_v13 = vld [vmem:[#allocation7 + $0x60] sm:$0xff]  ;;  %v608_v17 = vld [vmem:[#allocation7 + $0x58] sm:$0xff]  ;;  %v599_v20 = vld [vmem:[#allocation7 + $0x10] sm:$0xff] }
  0x15   :  { %269 = vmatpush.bf16.msra.mxu1 %v611_v5  ;;  %v585_v14 = vld [vmem:[#allocation5 + $0x20] sm:$0xff]  ;;  %v584_v18 = vld [vmem:[#allocation5 + $0x18] sm:$0xff]  ;;  %v607_v21 = vld [vmem:[#allocation7 + $0x50] sm:$0xff] }
  0x16   :  { %384 = vmatpush.bf16.msra.mxu2 %v587_v6  ;;  %v593_v15 = vld [vmem:[#allocation5 + $0x60] sm:$0xff]  ;;  %v592_v19 = vld [vmem:[#allocation5 + $0x58] sm:$0xff]  ;;  %v583_v22 = vld [vmem:[#allocation5 + $0x10] sm:$0xff] }
  0x17   :  { %403 = vmatpush.bf16.msra.mxu3 %v595_v7  ;;  %v591_v23 = vld [vmem:[#allocation5 + $0x50] sm:$0xff]  ;;  %v598_v24 = vld [vmem:[#allocation7 + $0x8] sm:$0xff]  ;;  %v65_v28 = vld [vmem:[#allocation2] sm:$0xff] }
  0x18   :  { %251 = vmatpush.bf16.msra.mxu0 %v602_v8  ;;  %v606_v25 = vld [vmem:[#allocation7 + $0x48] sm:$0xff]  ;;  %v67_v29 = vld [vmem:[#allocation2 + $0x10] sm:$0xff]  ;;  %v68_v31 = vld [vmem:[#allocation2 + $0x18] sm:$0xff]  ;;  %v73_v32 = vmul.f32 %v65_v28, %v65_v28 }
  0x19   :  { %270 = vmatpush.bf16.msra.mxu1 %v610_v9  ;;  %v582_v26 = vld [vmem:[#allocation5 + $0x8] sm:$0xff]  ;;  %v597_v33 = vld [vmem:[#allocation7] sm:$0xff]  ;;  %v75_v35 = vmul.f32 %v67_v29, %v67_v29  ;;  %v76_v37 = vmul.f32 %v68_v31, %v68_v31  ;;  %v85_v40 = vpack.c.bf16 %v67_v29, %v65_v28  ;;  %v71_v45 = vld [vmem:[#allocation2 + $0x30] sm:$0xff] }
  0x1a   :  { %385 = vmatpush.bf16.msra.mxu2 %v586_v10  ;;  %v590_v27 = vld [vmem:[#allocation5 + $0x48] sm:$0xff]  ;;  %v605_v34 = vld [vmem:[#allocation7 + $0x40] sm:$0xff]  ;;  %v72_v47 = vld [vmem:[#allocation2 + $0x38] sm:$0xff]  ;;  %v79_v49 = vmul.f32 %v71_v45, %v71_v45 }
  0x1b   :  { %404 = vmatpush.bf16.msra.mxu3 %v594_v11  ;;  %v66_v30 = vld [vmem:[#allocation2 + $0x8] sm:$0xff]  ;;  %v581_v38 = vld [vmem:[#allocation5] sm:$0xff]  ;;  %v81_v42 = vpack.c.bf16 %v75_v35, %v73_v32  ;;  %v80_v51 = vmul.f32 %v72_v47, %v72_v47 }
  0x1c   :  { %252 = vmatpush.bf16.msra.mxu0 %v601_v12  ;;  %v74_v36 = vmul.f32 %v66_v30, %v66_v30  ;;  %v589_v39 = vld [vmem:[#allocation5 + $0x40] sm:$0xff]  ;;  %v86_v41 = vpack.c.bf16 %v68_v31, %v66_v30  ;;  %v70_v46 = vld [vmem:[#allocation2 + $0x28] sm:$0xff] }
  0x1d   :  { %271 = vmatpush.bf16.msra.mxu1 %v609_v13  ;;  %v69_v44 = vld [vmem:[#allocation2 + $0x20] sm:$0xff]  ;;  %v78_v50 = vmul.f32 %v70_v46, %v70_v46  ;;  %v88_v53 = vpack.c.bf16 %v72_v47, %v70_v46 }
  0x1e   :  { %386 = vmatpush.bf16.msra.mxu2 %v585_v14  ;;  %v82_v43 = vpack.c.bf16 %v76_v37, %v74_v36  ;;  %v77_v48 = vmul.f32 %v69_v44, %v69_v44  ;;  %v87_v52 = vpack.c.bf16 %v71_v45, %v69_v44  ;;  %v623_v62 = vld [vmem:[%s779_s3] ss:$0 sm:$0xff]  ;;  %s733_s3 = smov [#allocation8]  }
  0x1f   :  { %405 = vmatpush.bf16.msra.mxu3 %v593_v15  ;;  %v84_v55 = vpack.c.bf16 %v80_v51, %v78_v50  ;;  %s437_s7 = sshll.u32 %s733_s3, 4  ;;  %s438_s7 = int_to_ptr.vmem [resolvable:$true] %s437_s7 }
  0x20   :  { %253 = vmatpush.bf16.msra.mxu0 %v600_v16  ;;  %v83_v54 = vpack.c.bf16 %v79_v49, %v77_v48 }
  0x21   :  { %272 = vmatpush.bf16.msra.mxu1 %v608_v17 }
  0x22   :  { %387 = vmatpush.bf16.msra.mxu2 %v584_v18 }
  0x23   :  { %406 = vmatpush.bf16.msra.mxu3 %v592_v19 }
  0x24   :  { %254 = vmatpush.bf16.msra.mxu0 %v599_v20 }
  0x25   :  { %273 = vmatpush.bf16.msra.mxu1 %v607_v21 }
  0x26   :  { %388 = vmatpush.bf16.msra.mxu2 %v583_v22 }
  0x27   :  { %407 = vmatpush.bf16.msra.mxu3 %v591_v23 }
  0x28   :  { %255 = vmatpush.bf16.msra.mxu0 %v598_v24 }
  0x29   :  { %274 = vmatpush.bf16.msra.mxu1 %v606_v25 }
  0x2a   :  { %389 = vmatpush.bf16.msra.mxu2 %v582_v26 }
  0x2b   :  { %408 = vmatpush.bf16.msra.mxu3 %v590_v27 }
  0x2c   :  { %256 = vmatpush.bf16.msra.mxu0 %v597_v33 }
  0x2d   :  { %275 = vmatpush.bf16.msra.mxu1 %v605_v34 }
  0x2e   :  { %390 = vmatpush.bf16.msra.mxu2 %v581_v38 }
  0x2f   :  { %409 = vmatpush.bf16.msra.mxu3 %v589_v39  ;;  %257 = vmatmul.bf16.vlgmr.msra.gmra.mxu0 %v85_v40 }
  0x30   :  { %276 = vmatmul.bf16.vlgmr.msra.gmra.mxu1 %v86_v41 }
  0x31   :  { %391 = vmatmul.bf16.vlgmr.msra.gmra.mxu2 %v81_v42 }
  0x32   :  { %410 = vmatmul.bf16.vlgmr.msra.gmra.mxu3 %v82_v43 }
  0x3f   :  { %262 = vmatmul.bf16.gmra.mxu0 %v87_v52 }
  0x40   :  { %281 = vmatmul.bf16.gmra.mxu1 %v88_v53 }
  0x41   :  { %396 = vmatmul.bf16.gmra.mxu2 %v83_v54 }
  0x42   :  { %415 = vmatmul.bf16.gmra.mxu3 %v84_v55 }
  0xac   :  { %v258_v56 = vpop.f32.mrf.mxu0 }
  0xad   :  { %v277_v57 = vpop.f32.mrf.mxu1 }
  0xae   :  { %v278_v58 = vadd.f32 %v277_v57, %v258_v56 }
  0xb4   :  { %v392_v59 = vpop.f32.mrf.mxu2  ;;  %v260_v63 = vpop.f32.mrf.mxu0 }
  0xb5   :  { %v411_v60 = vpop.f32.mrf.mxu3  ;;  %v393_v61 = vadd.f32 %v392_v59, %v278_v58  ;;  %v279_v0 = vpop.f32.mrf.mxu1 }
  0xb6   :  { %v280_v3 = vadd.f32 %v279_v0, %v260_v63 }
  0xb7   :  { %v412_v1 = vadd.f32 %v411_v60, %v393_v61 }
  0xb9   :  { %v425_v2 = vadd.f32 %v623_v62, %v412_v1 }
  0xbb   :  { %429 = vst [vmem:[#allocation8] sm:$0xff] %v425_v2 }
  0xbc   :  { %v394_v4 = vpop.f32.mrf.mxu2  ;;  %v263_v7 = vpop.f32.mrf.mxu0 }
  0xbd   :  { %v413_v5 = vpop.f32.mrf.mxu3  ;;  %v395_v6 = vadd.f32 %v394_v4, %v280_v3  ;;  %v282_v8 = vpop.f32.mrf.mxu1 }
  0xbe   :  { %v283_v11 = vadd.f32 %v282_v8, %v263_v7 }
  0xbf   :  { %v414_v9 = vadd.f32 %v413_v5, %v395_v6 }
  0xc1   :  { %v426_v10 = vadd.f32 %v623_v62, %v414_v9 }
  0xc3   :  { %430 = vst [vmem:[#allocation8 + $0x8] sm:$0xff] %v426_v10 }
  0xc4   :  { %v397_v12 = vpop.f32.mrf.mxu2  ;;  %v265_v16 = vpop.f32.mrf.mxu0 }
  0xc5   :  { %v416_v13 = vpop.f32.mrf.mxu3  ;;  %v398_v14 = vadd.f32 %v397_v12, %v283_v11  ;;  %v284_v17 = vpop.f32.mrf.mxu1 }
  0xc6   :  { %v285_v19 = vadd.f32 %v284_v17, %v265_v16 }
  0xc7   :  { %v417_v15 = vadd.f32 %v416_v13, %v398_v14 }
  0xc9   :  { %v427_v18 = vadd.f32 %v623_v62, %v417_v15 }
  0xcb   :  { %431 = vst [vmem:[#allocation8 + $0x10] sm:$0xff] %v427_v18 }
  0xcc   :  { %v399_v20 = vpop.f32.mrf.mxu2 }
  0xcd   :  { %v400_v21 = vadd.f32 %v399_v20, %v285_v19  ;;  %v418_v22 = vpop.f32.mrf.mxu3 }
  0xcf   :  { %v419_v23 = vadd.f32 %v418_v22, %v400_v21 }
  0xd1   :  { %v428_v24 = vadd.f32 %v623_v62, %v419_v23 }
  0xd3   :  { %432 = vst [vmem:[#allocation8 + $0x18] sm:$0xff] %v428_v24 }
  0xd4   :  { %445 = dma.vmem_to_hbm [thread:$0]  %s438_s7, 512, %s440_s10, [#allocation4], %s734_s11, %s734_s11, %s735_s12  }
  0xd5   :  { %724 = dma.done.wait [#allocation4], 512  }
  0xd6   :  { %725 = vsyncadd [#allocation4], 4294966784 }
  0xd7   :  { %450 = vsyncpa [#allocation3], 1 }
  0xd8   :  { %451 = vsyncpa [#allocation6], 1 }
  0xd9   :  { %452 = vsyncpa [#allocation4], 1 }

// kernel: tpu_custom_call.1
= control target key start
LH: loop header
LB: loop body
LE: loop exit
PB: predicated region body
PF: predicated region fallthrough
CT: control target
= control target key end

     0   :  { %9 = vsyncpa [#allocation3], 0  ;;  %s776_s0 = inlined_call_operand.hbm [shape: f32[32,256], index: 0, kind: input, shape index: {}]   ;;  %s777_s1 = inlined_call_operand.hbm [shape: bf16[256,128], index: 1, kind: input, shape index: {}]   ;;  %s778_s2 = inlined_call_operand.hbm [shape: bf16[256,128], index: 2, kind: input, shape index: {}]   ;;  %s779_s3 = inlined_call_operand.vmem [shape: f32[1,128], index: 3, kind: input, shape index: {}]   ;;  %s780_s4 = inlined_call_operand.hbm [shape: f32[32,128], index: 4, kind: output, shape index: {}]  }
   0x1   :  { %10 = vsyncpa [#allocation6], 0  ;;  %s29_s17 = sshll.u32 %s777_s1, 4  ;;  %s30_s17 = int_to_ptr.hbm [resolvable:$true] %s29_s17 }
   0x2   :  { %11 = vsyncpa [#allocation4], 0  ;;  %s726_s18 = smov [#allocation5]   ;;  %s16_s22 = sshll.u32 %s776_s0, 4  ;;  %s17_s22 = int_to_ptr.hbm [resolvable:$true] %s16_s22 }
   0x3   :  { %s31_s19 = sshll.u32 %s726_s18, 4  ;;  %s727_s23 = smov 64   ;;  %s32_s19 = int_to_ptr.vmem [resolvable:$true] %s31_s19 }
   0x4   :  { %s728_s24 = smov 4   ;;  %s729_s25 = smov [#allocation2]  }
   0x5   :  { %37 = dma.hbm_to_vmem [thread:$0]  %s30_s17, 2048, %s32_s19, [#allocation6], %s727_s23, %s727_s23, %s728_s24  }
   0x6   :  { %s18_s26 = sshll.u32 %s729_s25, 4  ;;  %s730_s27 = smov 256   ;;  %s19_s26 = int_to_ptr.vmem [resolvable:$true] %s18_s26 }
   0x7   :  { %s731_s28 = smov 16   ;;  %s42_s30 = sshll.u32 %s778_s2, 4  ;;  %s43_s30 = int_to_ptr.hbm [resolvable:$true] %s42_s30 }
   0x8   :  { %24 = dma.hbm_to_vmem [thread:$0]  %s17_s22, 1024, %s19_s26, [#allocation3], %s730_s27, %s730_s27, %s731_s28  }
   0x9   :  { %s732_s5 = smov [#allocation7]  }
   0xa   :  { %s44_s6 = sshll.u32 %s732_s5, 4  ;;  %s45_s6 = int_to_ptr.vmem [resolvable:$true] %s44_s6 }
   0xb   :  { %50 = dma.hbm_to_vmem [thread:$0]  %s43_s30, 2048, %s45_s6, [#allocation6], %s727_s23, %s727_s23, %s728_s24  }
   0xc   :  { %720 = dma.done.wait [#allocation3], 1024  }
   0xd   :  { %721 = vsyncadd [#allocation3], 4294966272 }
   0xe   :  { %722 = dma.done.wait [#allocation6], 4096  }
   0xf   :  { %723 = vsyncadd [#allocation6], 4294963200  ;;  %v604_v0 = vld [vmem:[#allocation7 + $0x38] sm:$0xff]  ;;  %v603_v4 = vld [vmem:[#allocation7 + $0x30] sm:$0xff]  ;;  %s439_s10 = sshll.u32 %s780_s4, 4  ;;  %s734_s11 = smov 128   ;;  %s440_s10 = int_to_ptr.hbm [resolvable:$true] %s439_s10 }
  0x10   :  { %v612_v1 = vld [vmem:[#allocation7 + $0x78] sm:$0xff]  ;;  %249 = vmatpush.bf16.msra.mxu0 %v604_v0  ;;  %v611_v5 = vld [vmem:[#allocation7 + $0x70] sm:$0xff]  ;;  %v602_v8 = vld [vmem:[#allocation7 + $0x28] sm:$0xff]  ;;  %s735_s12 = smov 8  }
  0x11   :  { %v588_v2 = vld [vmem:[#allocation5 + $0x38] sm:$0xff]  ;;  %268 = vmatpush.bf16.msra.mxu1 %v612_v1  ;;  %v587_v6 = vld [vmem:[#allocation5 + $0x30] sm:$0xff]  ;;  %v610_v9 = vld [vmem:[#allocation7 + $0x68] sm:$0xff] }
  0x12   :  { %v596_v3 = vld [vmem:[#allocation5 + $0x78] sm:$0xff]  ;;  %383 = vmatpush.bf16.msra.mxu2 %v588_v2  ;;  %v595_v7 = vld [vmem:[#allocation5 + $0x70] sm:$0xff]  ;;  %v586_v10 = vld [vmem:[#allocation5 + $0x28] sm:$0xff] }
  0x13   :  { %402 = vmatpush.bf16.msra.mxu3 %v596_v3  ;;  %v594_v11 = vld [vmem:[#allocation5 + $0x68] sm:$0xff]  ;;  %v601_v12 = vld [vmem:[#allocation7 + $0x20] sm:$0xff]  ;;  %v600_v16 = vld [vmem:[#allocation7 + $0x18] sm:$0xff] }
  0x14   :  { %250 = vmatpush.bf16.msra.mxu0 %v603_v4  ;;  %v609_v13 = vld [vmem:[#allocation7 + $0x60] sm:$0xff]  ;;  %v608_v17 = vld [vmem:[#allocation7 + $0x58] sm:$0xff]  ;;  %v599_v20 = vld [vmem:[#allocation7 + $0x10] sm:$0xff] }
  0x15   :  { %269 = vmatpush.bf16.msra.mxu1 %v611_v5  ;;  %v585_v14 = vld [vmem:[#allocation5 + $0x20] sm:$0xff]  ;;  %v584_v18 = vld [vmem:[#allocation5 + $0x18] sm:$0xff]  ;;  %v607_v21 = vld [vmem:[#allocation7 + $0x50] sm:$0xff] }
  0x16   :  { %384 = vmatpush.bf16.msra.mxu2 %v587_v6  ;;  %v593_v15 = vld [vmem:[#allocation5 + $0x60] sm:$0xff]  ;;  %v592_v19 = vld [vmem:[#allocation5 + $0x58] sm:$0xff]  ;;  %v583_v22 = vld [vmem:[#allocation5 + $0x10] sm:$0xff] }
  0x17   :  { %403 = vmatpush.bf16.msra.mxu3 %v595_v7  ;;  %v591_v23 = vld [vmem:[#allocation5 + $0x50] sm:$0xff]  ;;  %v598_v24 = vld [vmem:[#allocation7 + $0x8] sm:$0xff]  ;;  %v65_v28 = vld [vmem:[#allocation2] sm:$0xff] }
  0x18   :  { %251 = vmatpush.bf16.msra.mxu0 %v602_v8  ;;  %v606_v25 = vld [vmem:[#allocation7 + $0x48] sm:$0xff]  ;;  %v67_v29 = vld [vmem:[#allocation2 + $0x10] sm:$0xff]  ;;  %v68_v31 = vld [vmem:[#allocation2 + $0x18] sm:$0xff]  ;;  %v73_v32 = vmul.f32 %v65_v28, %v65_v28 }
  0x19   :  { %270 = vmatpush.bf16.msra.mxu1 %v610_v9  ;;  %v582_v26 = vld [vmem:[#allocation5 + $0x8] sm:$0xff]  ;;  %v597_v33 = vld [vmem:[#allocation7] sm:$0xff]  ;;  %v75_v35 = vmul.f32 %v67_v29, %v67_v29  ;;  %v76_v37 = vmul.f32 %v68_v31, %v68_v31  ;;  %v85_v40 = vpack.c.bf16 %v67_v29, %v65_v28  ;;  %v71_v45 = vld [vmem:[#allocation2 + $0x30] sm:$0xff] }
  0x1a   :  { %385 = vmatpush.bf16.msra.mxu2 %v586_v10  ;;  %v590_v27 = vld [vmem:[#allocation5 + $0x48] sm:$0xff]  ;;  %v605_v34 = vld [vmem:[#allocation7 + $0x40] sm:$0xff]  ;;  %v72_v47 = vld [vmem:[#allocation2 + $0x38] sm:$0xff]  ;;  %v79_v49 = vmul.f32 %v71_v45, %v71_v45 }
  0x1b   :  { %404 = vmatpush.bf16.msra.mxu3 %v594_v11  ;;  %v66_v30 = vld [vmem:[#allocation2 + $0x8] sm:$0xff]  ;;  %v581_v38 = vld [vmem:[#allocation5] sm:$0xff]  ;;  %v81_v42 = vpack.c.bf16 %v75_v35, %v73_v32  ;;  %v80_v51 = vmul.f32 %v72_v47, %v72_v47 }
  0x1c   :  { %252 = vmatpush.bf16.msra.mxu0 %v601_v12  ;;  %v74_v36 = vmul.f32 %v66_v30, %v66_v30  ;;  %v589_v39 = vld [vmem:[#allocation5 + $0x40] sm:$0xff]  ;;  %v86_v41 = vpack.c.bf16 %v68_v31, %v66_v30  ;;  %v70_v46 = vld [vmem:[#allocation2 + $0x28] sm:$0xff] }
  0x1d   :  { %271 = vmatpush.bf16.msra.mxu1 %v609_v13  ;;  %v69_v44 = vld [vmem:[#allocation2 + $0x20] sm:$0xff]  ;;  %v78_v50 = vmul.f32 %v70_v46, %v70_v46  ;;  %v88_v53 = vpack.c.bf16 %v72_v47, %v70_v46 }
  0x1e   :  { %386 = vmatpush.bf16.msra.mxu2 %v585_v14  ;;  %v82_v43 = vpack.c.bf16 %v76_v37, %v74_v36  ;;  %v77_v48 = vmul.f32 %v69_v44, %v69_v44  ;;  %v87_v52 = vpack.c.bf16 %v71_v45, %v69_v44  ;;  %v623_v62 = vld [vmem:[%s779_s3] ss:$0 sm:$0xff]  ;;  %s733_s3 = smov [#allocation8]  }
  0x1f   :  { %405 = vmatpush.bf16.msra.mxu3 %v593_v15  ;;  %v84_v55 = vpack.c.bf16 %v80_v51, %v78_v50  ;;  %s437_s7 = sshll.u32 %s733_s3, 4  ;;  %s438_s7 = int_to_ptr.vmem [resolvable:$true] %s437_s7 }
  0x20   :  { %253 = vmatpush.bf16.msra.mxu0 %v600_v16  ;;  %v83_v54 = vpack.c.bf16 %v79_v49, %v77_v48 }
  0x21   :  { %272 = vmatpush.bf16.msra.mxu1 %v608_v17 }
  0x22   :  { %387 = vmatpush.bf16.msra.mxu2 %v584_v18 }
  0x23   :  { %406 = vmatpush.bf16.msra.mxu3 %v592_v19 }
  0x24   :  { %254 = vmatpush.bf16.msra.mxu0 %v599_v20 }
  0x25   :  { %273 = vmatpush.bf16.msra.mxu1 %v607_v21 }
  0x26   :  { %388 = vmatpush.bf16.msra.mxu2 %v583_v22 }
  0x27   :  { %407 = vmatpush.bf16.msra.mxu3 %v591_v23 }
  0x28   :  { %255 = vmatpush.bf16.msra.mxu0 %v598_v24 }
  0x29   :  { %274 = vmatpush.bf16.msra.mxu1 %v606_v25 }
  0x2a   :  { %389 = vmatpush.bf16.msra.mxu2 %v582_v26 }
  0x2b   :  { %408 = vmatpush.bf16.msra.mxu3 %v590_v27 }
  0x2c   :  { %256 = vmatpush.bf16.msra.mxu0 %v597_v33 }
  0x2d   :  { %275 = vmatpush.bf16.msra.mxu1 %v605_v34 }
  0x2e   :  { %390 = vmatpush.bf16.msra.mxu2 %v581_v38 }
  0x2f   :  { %409 = vmatpush.bf16.msra.mxu3 %v589_v39  ;;  %257 = vmatmul.bf16.vlgmr.msra.gmra.mxu0 %v85_v40 }
  0x30   :  { %276 = vmatmul.bf16.vlgmr.msra.gmra.mxu1 %v86_v41 }
  0x31   :  { %391 = vmatmul.bf16.vlgmr.msra.gmra.mxu2 %v81_v42 }
  0x32   :  { %410 = vmatmul.bf16.vlgmr.msra.gmra.mxu3 %v82_v43 }
  0x3f   :  { %262 = vmatmul.bf16.gmra.mxu0 %v87_v52 }
  0x40   :  { %281 = vmatmul.bf16.gmra.mxu1 %v88_v53 }
  0x41   :  { %396 = vmatmul.bf16.gmra.mxu2 %v83_v54 }
  0x42   :  { %415 = vmatmul.bf16.gmra.mxu3 %v84_v55 }
  0xac   :  { %v258_v56 = vpop.f32.mrf.mxu0 }
  0xad   :  { %v277_v57 = vpop.f32.mrf.mxu1 }
  0xae   :  { %v278_v58 = vadd.f32 %v277_v57, %v258_v56 }
  0xb4   :  { %v392_v59 = vpop.f32.mrf.mxu2  ;;  %v260_v63 = vpop.f32.mrf.mxu0 }
  0xb5   :  { %v411_v60 = vpop.f32.mrf.mxu3  ;;  %v393_v61 = vadd.f32 %v392_v59, %v278_v58  ;;  %v279_v0 = vpop.f32.mrf.mxu1 }
  0xb6   :  { %v280_v3 = vadd.f32 %v279_v0, %v260_v63 }
  0xb7   :  { %v412_v1 = vadd.f32 %v411_v60, %v393_v61 }
  0xb9   :  { %v425_v2 = vadd.f32 %v623_v62, %v412_v1 }
  0xbb   :  { %429 = vst [vmem:[#allocation8] sm:$0xff] %v425_v2 }
  0xbc   :  { %v394_v4 = vpop.f32.mrf.mxu2  ;;  %v263_v7 = vpop.f32.mrf.mxu0 }
  0xbd   :  { %v413_v5 = vpop.f32.mrf.mxu3  ;;  %v395_v6 = vadd.f32 %v394_v4, %v280_v3  ;;  %v282_v8 = vpop.f32.mrf.mxu1 }
  0xbe   :  { %v283_v11 = vadd.f32 %v282_v8, %v263_v7 }
  0xbf   :  { %v414_v9 = vadd.f32 %v413_v5, %v395_v6 }
  0xc1   :  { %v426_v10 = vadd.f32 %v623_v62, %v414_v9 }
  0xc3   :  { %430 = vst [vmem:[#allocation8 + $0x8] sm:$0xff] %v426_v10 }
  0xc4   :  { %v397_v12 = vpop.f32.mrf.mxu2  ;;  %v265_v16 = vpop.f32.mrf.mxu0 }
  0xc5   :  { %v416_v13 = vpop.f32.mrf.mxu3  ;;  %v398_v14 = vadd.f32 %v397_v12, %v283_v11  ;;  %v284_v17 = vpop.f32.mrf.mxu1 }
  0xc6   :  { %v285_v19 = vadd.f32 %v284_v17, %v265_v16 }
  0xc7   :  { %v417_v15 = vadd.f32 %v416_v13, %v398_v14 }
  0xc9   :  { %v427_v18 = vadd.f32 %v623_v62, %v417_v15 }
  0xcb   :  { %431 = vst [vmem:[#allocation8 + $0x10] sm:$0xff] %v427_v18 }
  0xcc   :  { %v399_v20 = vpop.f32.mrf.mxu2 }
  0xcd   :  { %v400_v21 = vadd.f32 %v399_v20, %v285_v19  ;;  %v418_v22 = vpop.f32.mrf.mxu3 }
  0xcf   :  { %v419_v23 = vadd.f32 %v418_v22, %v400_v21 }
  0xd1   :  { %v428_v24 = vadd.f32 %v623_v62, %v419_v23 }
  0xd3   :  { %432 = vst [vmem:[#allocation8 + $0x18] sm:$0xff] %v428_v24 }
  0xd4   :  { %445 = dma.vmem_to_hbm [thread:$0]  %s438_s7, 512, %s440_s10, [#allocation4], %s734_s11, %s734_s11, %s735_s12  }
  0xd5   :  { %724 = dma.done.wait [#allocation4], 512  }
  0xd6   :  { %725 = vsyncadd [#allocation4], 4294966784 }
  0xd7   :  { %450 = vsyncpa [#allocation3], 1 }
  0xd8   :  { %451 = vsyncpa [#allocation6], 1 }
  0xd9   :  { %452 = vsyncpa [#allocation4], 1 }

</bundles_post_ra>
